<compile_context>
chip_gen: v7x
topology: tpu7x:2x2x1
jax: 0.10.0
libtpu: 0.0.40
codegen_flags: <defaults>
</compile_context>

<pallas_src>
import functools

import jax
import jax.numpy as jnp
import numpy as np
from jax.experimental import pallas as pl
from jax.experimental.pallas import tpu as pltpu


def _round_up(x, m):
    return -(-x // m) * m


def _upsample_kernel(w_ref, b_ref, x_ref, o_ref):
    """One (batch, time-tile) step of the polyphase transposed conv.

    w_ref: (D, s*C_out, C_in)   per-tap polyphase weights (compute dtype)
    b_ref: (s*C_out, 1)         per-(phase, channel) bias, float32
    x_ref: (1, 1, C_in, W_in)   halo'd input window, W_in >= tile + D - 1
    o_ref: (1, s*C_out, tile)   per-phase output tile (compute dtype)
    """
    tile = o_ref.shape[-1]
    taps = w_ref.shape[0]
    xw = x_ref[0, 0]                                       # (C_in, W_in)
    # D small MXU pushes, f32 accumulation; per-tap windows are static lane
    # slices of the single loaded halo'd window (no HBM-duplicated slab).
    acc = jnp.dot(w_ref[0], xw[:, 0:tile],
                  preferred_element_type=jnp.float32)      # (s*C_out, tile)
    for d in range(1, taps):                               # static; D is tiny
        acc = acc + jnp.dot(w_ref[d], xw[:, d:d + tile],
                            preferred_element_type=jnp.float32)
    o_ref[0] = (acc + b_ref[...]).astype(o_ref.dtype)


def prepare_upsampling_params(weight, bias, stride, filter_sz,
                              compute_dtype=None):
    """Call-once (per layer) weight preprocessing, hoisted out of the hot path.

    weight: (C_in, C_out, K) -- PyTorch ConvTranspose1d layout.
    Returns:
      w_taps:    (D, stride*C_out, C_in), D = ceil(K/stride), where
                 w_taps[d, r*C_out + o, c] = weight[c, o, r + K - stride - d*stride]
                 (zero where that tap index falls outside [0, K)).
      bias_rows: (stride*C_out, 1) float32, bias_rows[r*C_out + o] = bias[o].
    """
    c_in, c_out, K = weight.shape
    s = stride
    D = -(-K // s)                                         # ceil(K / s)
    r_idx = np.arange(s)[:, None]                          # (s, 1)
    d_idx = np.arange(D)[None, :]                          # (1, D)
    q = r_idx + K - s - d_idx * s                          # tap idx per (phase, d)
    valid = (q >= 0) & (q < K)
    qc = np.clip(q, 0, K - 1)
    wg = jnp.transpose(weight, (2, 0, 1))[qc]              # (s, D, C_in, C_out)
    wg = wg * jnp.asarray(valid[:, :, None, None], wg.dtype)
    w_taps = jnp.transpose(wg, (1, 0, 3, 2)).reshape(D, s * c_out, c_in)
    if compute_dtype is not None:                          # hoisted dtype cast
        w_taps = w_taps.astype(compute_dtype)
    bias_rows = jnp.tile(bias.astype(jnp.float32), (s,)).reshape(s * c_out, 1)
    return w_taps, bias_rows


def upsampling_forward(lc, w_taps, bias_rows, stride, filter_sz,
                       tile_m=1024, compute_dtype=None):
    """Equivalent of nn.ConvTranspose1d(C, C, filter_sz, stride,
    padding=filter_sz - stride, bias=True) applied to lc (B, C, S).

    Output dtype == compute dtype (== lc.dtype unless compute_dtype, e.g.
    jnp.bfloat16 -- recommended on v6e/v7x -- is given)."""
    B, C, S = lc.shape
    K, s = filter_sz, stride
    D = -(-K // s)                                         # taps per phase
    T = (S + 1) * s - K                                    # ConvTranspose1d len
    M = -(-T // s)                                         # per-phase length

    cdt = np.dtype(compute_dtype if compute_dtype is not None else lc.dtype)
    s_c = w_taps.shape[1]                                  # s * C_out
    c_out = s_c // s

    # ---- time tile: lane-dense (multiple of 128), sized against a VMEM
    #      budget that is safe on v7x (64 MiB physical) and ample on v5e/v6e.
    elt = cdt.itemsize
    w_bytes = D * s_c * C * elt
    b_bytes = s_c * 4
    foot_budget = 30 * 1024 * 1024

    def _foot(t):
        w_in_ = _round_up(t + D - 1, 128)
        return w_bytes + b_bytes + 2 * C * w_in_ * elt + 2 * s_c * t * elt

    tile = min(max(128, (int(tile_m) // 128) * 128), _round_up(M, 128))
    while tile > 128 and _foot(tile) > foot_budget:
        tile -= 128
    w_in = _round_up(tile + D - 1, 128)
    m_pad = _round_up(M, tile)
    n_t = m_pad // tile
    vmem_limit = int(min(42 * 1024 * 1024,
                         max(4 * _foot(tile), 16 * 1024 * 1024)))

    # ---- halo'd input windows.  Window mt covers per-phase positions
    #      [mt*tile, mt*tile + w_in); when n_t == 1 this is just a reshape of
    #      the zero-padded input (no extra copy).
    src_len = (n_t - 1) * tile + w_in                      # >= M + D - 1 >= S
    lc_c = lc.astype(cdt)
    lc_pad = jnp.pad(lc_c, ((0, 0), (0, 0), (0, src_len - S)))
    if n_t == 1:
        x_win = lc_pad[:, None, :, :]                      # (B, 1, C, w_in)
    else:
        x_win = jnp.stack(
            [lc_pad[:, :, i * tile:i * tile + w_in] for i in range(n_t)],
            axis=1)                                        # (B, n_t, C, w_in)

    w_taps_c = w_taps.astype(cdt)                          # no-op if pre-cast

    # ---- grid: lead with an even batch axis, else the time-tile axis, so the
    #      v7x megacore gets balanced "parallel" work (v5e/v6e unaffected).
    if B == 1:
        grid = (n_t,)
        dims = ("parallel",)
        to_bm = lambda mt: (0, mt)
    elif B % 2 == 0:
        grid = (B, n_t)
        dims = ("parallel", "parallel")
        to_bm = lambda b, mt: (b, mt)
    else:
        grid = (n_t, B)
        dims = ("parallel", "parallel")
        to_bm = lambda mt, b: (b, mt)

    im_w = lambda *g: (0, 0, 0)
    im_b = lambda *g: (0, 0)
    im_x = lambda *g: (to_bm(*g)[0], to_bm(*g)[1], 0, 0)
    im_o = lambda *g: (to_bm(*g)[0], 0, to_bm(*g)[1])

    out = pl.pallas_call(
        _upsample_kernel,
        out_shape=jax.ShapeDtypeStruct((B, s_c, m_pad), cdt),
        grid=grid,
        in_specs=[
            pl.BlockSpec((D, s_c, C), im_w),
            pl.BlockSpec((s_c, 1), im_b),
            pl.BlockSpec((1, 1, C, w_in), im_x),
        ],
        out_specs=pl.BlockSpec((1, s_c, tile), im_o),
        compiler_params=pltpu.CompilerParams(
            dimension_semantics=dims,
            vmem_limit_bytes=vmem_limit),
    )(w_taps_c, bias_rows, x_win)

    # ---- s-way phase interleave (on the narrow dtype; rows are (phase, chan)).
    y = out.reshape(B, s, c_out, m_pad)
    y = jnp.transpose(y, (0, 2, 3, 1)).reshape(B, c_out, m_pad * s)
    return y[:, :, :T]


def _reference(lc, weight, bias, stride, filter_sz):
    """Direct ConvTranspose1d formula (NumPy, for verification)."""
    lc = np.asarray(lc, np.float64)
    W = np.asarray(weight, np.float64)
    b = np.asarray(bias, np.float64)
    B, C, S = lc.shape
    K, s = filter_sz, stride
    p = K - s
    T = (S + 1) * s - K
    y = np.tile(b[None, :, None], (B, 1, T))
    for i in range(S):
        for k in range(K):
            t = i * s - p + k
            if 0 <= t < T:
                y[:, :, t] += lc[:, :, i] @ W[:, :, k]
    return y


if __name__ == "__main__":
    n_chan, filter_sz, stride = 4, 8, 4

    key = jax.random.PRNGKey(0)
    kx, kw, kb = jax.random.split(key, 3)

    # Deterministic xavier-uniform-style init (netmisc.xavier_init analogue).
    fan = n_chan * filter_sz
    limit = float(np.sqrt(6.0 / (fan + fan)))
    weight = jax.random.uniform(kw, (n_chan, n_chan, filter_sz), jnp.float32,
                                -limit, limit)             # (C_in, C_out, K)
    bias = jax.random.uniform(kb, (n_chan,), jnp.float32, -limit, limit)

    # Hoisted, once-per-layer weight preprocessing (f32 and bf16 variants).
    w32, brow = prepare_upsampling_params(weight, bias, stride, filter_sz)
    wbf, _ = prepare_upsampling_params(weight, bias, stride, filter_sz,
                                       compute_dtype=jnp.bfloat16)

    def run(lc, w, b, tile_m=1024, compute_dtype=None):
        fn = jax.jit(functools.partial(
            upsampling_forward, stride=stride, filter_sz=filter_sz,
            tile_m=tile_m, compute_dtype=compute_dtype))
        return jax.block_until_ready(fn(lc, w, b))

    # 1) Even batch, short sequence: exact f32 path (output stays f32).
    B, S = 2, 8
    lc = jax.random.normal(kx, (B, n_chan, S), jnp.float32)
    ref = _reference(lc, weight, bias, stride, filter_sz)
    out = run(lc, w32, brow)
    assert out.shape == ref.shape and out.dtype == lc.dtype
    np.testing.assert_allclose(np.asarray(out), ref, rtol=1e-5, atol=1e-5)

    # 2) Same inputs, bf16 compute + bf16 output (v6e / v7x recommendation;
    #    MXU accumulation stays f32).
    out_bf = run(lc, wbf, brow, compute_dtype=jnp.bfloat16)
    assert out_bf.dtype == jnp.bfloat16
    np.testing.assert_allclose(np.asarray(out_bf.astype(jnp.float32)), ref,
                               rtol=5e-2, atol=5e-2)

    # 3) B=1, longer sequence with a small tile: exercises the multi-tile
    #    halo'd-window path and the single "parallel" time-axis grid.
    lc1 = jax.random.normal(jax.random.PRNGKey(1), (1, n_chan, 300),
                            jnp.float32)
    ref1 = _reference(lc1, weight, bias, stride, filter_sz)
    out1 = run(lc1, w32, brow, tile_m=128)
    np.testing.assert_allclose(np.asarray(out1), ref1, rtol=1e-5, atol=1e-5)

    # 4) Odd batch > 1: exercises the time-major grid ordering.
    lc3 = jax.random.normal(jax.random.PRNGKey(2), (3, n_chan, 20),
                            jnp.float32)
    ref3 = _reference(lc3, weight, bias, stride, filter_sz)
    out3 = run(lc3, w32, brow)
    np.testing.assert_allclose(np.asarray(out3), ref3, rtol=1e-5, atol=1e-5)

    print("KERNEL_OK")
</pallas_src>

<mosaic_0001>
module attributes {stable_mosaic.version = 11 : i64} {
  func.func @_upsample_kernel(%arg0: i32, %arg1: i32, %arg2: memref<2x16x4xf32, #tpu.memory_space<vmem>>, %arg3: memref<16x1xf32, #tpu.memory_space<vmem>>, %arg4: memref<1x1x4x256xf32, #tpu.memory_space<vmem>>, %arg5: memref<1x16x128xf32, #tpu.memory_space<vmem>>) attributes {dimension_semantics = [#tpu.dimension_semantics<parallel>, #tpu.dimension_semantics<parallel>], iteration_bounds = array<i64: 2, 1>, scalar_prefetch = 0 : i64, scratch_operands = 0 : i64, tpu.core_type = #tpu.core_type<tc>, window_params = [{pipeline_mode = #tpu.pipeline_mode<synchronous>, transform_indices = @transform_0, window_bounds = array<i64: 2, 16, 4>}, {pipeline_mode = #tpu.pipeline_mode<synchronous>, transform_indices = @transform_1, window_bounds = array<i64: 16, 1>}, {transform_indices = @transform_2, window_bounds = array<i64: 1, 1, 4, 256>}, {transform_indices = @transform_3, window_bounds = array<i64: 1, 16, 128>}]} {
    %c0 = arith.constant 0 : index
    %c0_0 = arith.constant 0 : index
    %c0_1 = arith.constant 0 : index
    %c0_2 = arith.constant 0 : index
    %0 = vector.load %arg4[%c0, %c0_0, %c0_1, %c0_2] : memref<1x1x4x256xf32, #tpu.memory_space<vmem>>, vector<1x1x4x256xf32>
    %1 = vector.shape_cast %0 : vector<1x1x4x256xf32> to vector<4x256xf32>
    %c0_3 = arith.constant 0 : index
    %c0_4 = arith.constant 0 : index
    %c0_5 = arith.constant 0 : index
    %2 = vector.load %arg2[%c0_3, %c0_4, %c0_5] : memref<2x16x4xf32, #tpu.memory_space<vmem>>, vector<1x16x4xf32>
    %3 = vector.shape_cast %2 : vector<1x16x4xf32> to vector<16x4xf32>
    %4 = vector.extract_strided_slice %1 {offsets = [0, 0], sizes = [4, 128], strides = [1, 1]} : vector<4x256xf32> to vector<4x128xf32>
    %cst = arith.constant dense<0.000000e+00> : vector<16x128xf32>
    %5 = tpu.matmul %3, %4, %cst {dimension_numbers = #tpu.dot_dimension_numbers<[1], [0], [0], [1], [0, 0, 1, 1], [], []>} : vector<16x4xf32>, vector<4x128xf32>, vector<16x128xf32> -> vector<16x128xf32>
    %c1 = arith.constant 1 : index
    %c0_6 = arith.constant 0 : index
    %c0_7 = arith.constant 0 : index
    %6 = vector.load %arg2[%c1, %c0_6, %c0_7] : memref<2x16x4xf32, #tpu.memory_space<vmem>>, vector<1x16x4xf32>
    %7 = vector.shape_cast %6 : vector<1x16x4xf32> to vector<16x4xf32>
    %8 = vector.extract_strided_slice %1 {offsets = [0, 1], sizes = [4, 128], strides = [1, 1]} : vector<4x256xf32> to vector<4x128xf32>
    %cst_8 = arith.constant dense<0.000000e+00> : vector<16x128xf32>
    %9 = tpu.matmul %7, %8, %cst_8 {dimension_numbers = #tpu.dot_dimension_numbers<[1], [0], [0], [1], [0, 0, 1, 1], [], []>} : vector<16x4xf32>, vector<4x128xf32>, vector<16x128xf32> -> vector<16x128xf32>
    %10 = arith.addf %5, %9 : vector<16x128xf32>
    %c0_9 = arith.constant 0 : index
    %c0_10 = arith.constant 0 : index
    %11 = vector.load %arg3[%c0_9, %c0_10] : memref<16x1xf32, #tpu.memory_space<vmem>>, vector<16x1xf32>
    %12 = vector.broadcast %11 : vector<16x1xf32> to vector<16x128xf32>
    %13 = arith.addf %10, %12 : vector<16x128xf32>
    %c0_11 = arith.constant 0 : index
    %c0_12 = arith.constant 0 : index
    %c0_13 = arith.constant 0 : index
    %14 = vector.load %arg5[%c0_11, %c0_12, %c0_13] : memref<1x16x128xf32, #tpu.memory_space<vmem>>, vector<1x16x128xf32>
    %15 = vector.shape_cast %14 : vector<1x16x128xf32> to vector<16x128xf32>
    %16 = vector.shape_cast %13 : vector<16x128xf32> to vector<1x16x128xf32>
    tpu.vector_store %arg5[%c0_11, %c0_12, %c0_13], %16 {strides = array<i32>} : memref<1x16x128xf32, #tpu.memory_space<vmem>>, vector<1x16x128xf32>,
    return
  }
  func.func @transform_0(%arg0: i32, %arg1: i32) -> (i32, i32, i32) {
    %c0_i32 = arith.constant 0 : i32
    %c0_i32_0 = arith.constant 0 : i32
    %c0_i32_1 = arith.constant 0 : i32
    %c0_i32_2 = arith.constant 0 : i32
    return %c0_i32, %c0_i32_0, %c0_i32_1 : i32, i32, i32
  }
  func.func @transform_1(%arg0: i32, %arg1: i32) -> (i32, i32) {
    %c0_i32 = arith.constant 0 : i32
    %c0_i32_0 = arith.constant 0 : i32
    %c0_i32_1 = arith.constant 0 : i32
    return %c0_i32, %c0_i32_0 : i32, i32
  }
  func.func @transform_2(%arg0: i32, %arg1: i32) -> (i32, i32, i32, i32) {
    %c0_i32 = arith.constant 0 : i32
    %c0_i32_0 = arith.constant 0 : i32
    %c0_i32_1 = arith.constant 0 : i32
    return %arg0, %arg1, %c0_i32, %c0_i32_0 : i32, i32, i32, i32
  }
  func.func @transform_3(%arg0: i32, %arg1: i32) -> (i32, i32, i32) {
    %c0_i32 = arith.constant 0 : i32
    %c0_i32_0 = arith.constant 0 : i32
    return %arg0, %c0_i32, %arg1 : i32, i32, i32
  }
}

</mosaic_0001>

<bundles_post_ra>
// kernel: upsampling_forward.1
= control target key start
LH: loop header
LB: loop body
LE: loop exit
PB: predicated region body
PF: predicated region fallthrough
CT: control target
= control target key end

     0   :  { %s603_s12 = smov 0   ;;  %s605_s13 = smov 0   ;;  %s666_s0 = inlined_call_operand.vmem [shape: f32[2,16,4], index: 0, kind: input, shape index: {}]   ;;  %s667_s1 = inlined_call_operand.vmem [shape: f32[16,1], index: 1, kind: input, shape index: {}]   ;;  %s668_s2 = inlined_call_operand.vmem [shape: f32[2,1,4,256], index: 2, kind: input, shape index: {}]   ;;  %s669_s3 = inlined_call_operand.vmem [shape: f32[2,16,128], index: 3, kind: output, shape index: {}]  }
   0x1   :  { %s607_s14 = smov 0  }
   0x2 LB: > { %s25_s15 = sadd.s32 1, %s575_s13  ;;  %p493_p0 = scmp.ge.s32.totalorder %s579_s14, 1  ;;  %s579_s14 = sphi %s607_s14, %s13_s14   ;;  %s575_s13 = sphi %s605_s13, %s671_s13   ;;  %s571_s12 = sphi %s603_s12, %s670_s12  }
   0x3   : > { %p27_p1 = scmp.ge.s32.totalorder %s25_s15, 2  ;;  %p157_p2 = scmp.lt.s32.totalorder %s579_s14, 3 }
   0x5   : > { %s673_s15 = smov (%p27_p1, %s25_s15), 0  ;;  %p158_p3 = pnand %p493_p0, %p157_p2 }
   0x6   : > { %p188_p4 = scmp.lt.s32.totalorder (!%p158_p3), %s571_s12, 1  ;;  %v206_v0 = vld [vmem:[%s666_s0] sm:$0xff] (!%p158_p3)  ;;  %vm219_vm0 = vcmask (!%p158_p3), 31744   ;;  %v498_v1 = vld [vmem:[%s666_s0 + $0x10] sm:$0xff] (!%p158_p3)  ;;  %v581_v2 = vmov (!%p158_p3), 0   ;;  %vm226_vm1 = vcmask (!%p158_p3), 1043456  }
   0x7   : > { %161 = sbr.rel (%p158_p3) target bundleno = 358 (0x166), region = 32  ;;  %523 = vmatprep.mubr.msk.f32.mxu0 (!%p158_p3), %vm219_vm0, %v206_v0  ;;  %518 = vmatprep.mubr.msk.f32.mxu1 (!%p158_p3), %vm219_vm0, %v498_v1  ;;  %v387_v3 = vld [vmem:[%s667_s1] sm:$0xff] (!%p158_p3)  ;;  %v388_v4 = vld [vmem:[%s667_s1 + $0x8] sm:$0xff] (!%p158_p3)  ;;  %s582_s30 = smov (!%p158_p3), 127   ;;  %vm217_vm2 = vcmask (!%p158_p3), 1039360   ;;  %v499_v11 = vld [vmem:[%s666_s0 + $0x18] sm:$0xff] (!%p158_p3) }
   0x8   : > { %554 = vset.pattern.permute.xlu1 (!%p158_p3), %v581_v2  ;;  %555 = vset.pattern.permute.xlu0 (!%p158_p3), %v581_v2  ;;  %v207_v6 = vld [vmem:[%s666_s0 + $0x8] sm:$0xff] (!%p158_p3) }
   0x9   : > { %391 = vperm.xlu1 (!%p158_p3), %554, %v387_v3  }
   0xd   : > { %396 = vperm.xlu1 (!%p158_p3), %554, %v388_v4  }
   0xe   : > { %s675_s12 = smov (!%p188_p4, %s571_s12), 1 }
   0xf   : > { %s508_s22 = sshll.u32 %s675_s12, 3  ;;  %s509_s6 = sshll.u32 %s675_s12, 4 }
  0x10   : > { %s196_s25 = scalar_lea.vmem %s668_s2, %s508_s22  ;;  %s204_s9 = scalar_lea.vmem %s669_s3, %s509_s6 }
  0x11   : > { %v205_v5 = vld [vmem:[%s196_s25] sm:$0xff] }
  0x12   : > { %213 = vrot.lane.b32.xlu0 %v205_v5, %s582_s30  ;;  %v212_v7 = vcombine.high %v205_v5, %v205_v5  ;;  %521 = vmatprep.subr.msk.mxu0 %vm226_vm1, %v205_v5 }
  0x13   : > { %522 = vmatpush3.msk.msra.mxu0 %vm226_vm1, %v205_v5 }
  0x14   : > { %524 = vmatmul.mubr.msk.f32.vlgmr.msra.gmra.mrb[0].mxu0 %vm219_vm0, %v207_v6 }
  0x16   : > { %215 = vrot.lane.b32.xlu0 %v212_v7, %s582_s30 }
  0x84   : > { %v214_v8 = vpop.permute.xlu0 %213 }
  0x88   : > { %v216_v9 = vpop.permute.xlu0 %215  ;;  %v392_v14 = vpop.permute.xlu1 %391 }
  0x89   : > { %v218_v10 = vsel %vm217_vm2, %v214_v8, %v216_v9 }
  0x8a   : > { %516 = vmatprep.subr.msk.mxu1 %vm226_vm1, %v218_v10 }
  0x8b   : > { %517 = vmatpush3.msk.msra.mxu1 %vm226_vm1, %v218_v10 }
  0x8c   : > { %519 = vmatmul.mubr.msk.f32.vlgmr.msra.gmra.mrb[0].mxu1 %vm219_vm0, %v499_v11  ;;  %v397_v18 = vpop.permute.xlu1 %396 }
  0xe7   : > { %v525_v12 = vpop.f32.mrb[0].mxu0 }
  0xe8   : > { %v378_v13 = vpop.f32.mrb[1].mxu0 }
 0x15f   : > { %v520_v15 = vpop.f32.mrb[0].mxu1 }
 0x160   : > { %v384_v16 = vadd.f32 %v525_v12, %v520_v15  ;;  %v295_v17 = vpop.f32.mrb[1].mxu1 }
 0x161   : > { %v379_v19 = vadd.f32 %v378_v13, %v295_v17 }
 0x162   : > { %v400_v20 = vadd.f32 %v397_v18, %v384_v16 }
 0x163   : > { %v399_v21 = vadd.f32 %v392_v14, %v379_v19 }
 0x164   : > { %402 = vst [vmem:[%s204_s9 + $0x8] sm:$0xff] %v400_v20 }
 0x165   : > { %401 = vst [vmem:[%s204_s9] sm:$0xff] %v399_v21 }
 0x166 PF: > { %s13_s14 = sadd.s32 1, %s579_s14   ;;  %s670_s12 = smov %s575_s13 }
 0x167   : > { %p10_p5 = scmp.ge.s32.totalorder %s13_s14, 4   ;;  %s671_s13 = smov %s673_s15 }
 0x169   :  { %12 = sbr.rel (!%p10_p5) target bundleno = 2 (0x2), region = 63 }

</bundles_post_ra>
